<compile_context>
chip_gen: v5e
topology: v5e:2x2
jax: 0.10.0
libtpu: 0.0.40
codegen_flags: <defaults>
</compile_context>

<pallas_src>
import jax
import jax.numpy as jnp
from jax.experimental import pallas as pl
from jax.experimental.pallas import tpu as pltpu


# --------------------------------------------------------------------------- #
# Kernel
# --------------------------------------------------------------------------- #
def mlp_kernel(x_ref, wfc_ref, bfc_ref, wproj_ref, bproj_ref, o_ref, acc_ref):
    # x_ref:     (tm, C)   tile of flattened tokens (resident across k)
    # wfc_ref:   (C, th)   chunk of c_fc weight, (in, out) layout
    # bfc_ref:   (1, th)   chunk of c_fc bias
    # wproj_ref: (th, C)   chunk of c_proj weight, (in, out) layout
    # bproj_ref: (1, C)    c_proj bias (resident)
    # o_ref:     (tm, C)   output tile (written on last reduction step)
    # acc_ref:   (tm, C)   f32 VMEM accumulator
    k = pl.program_id(1)

    # c_fc chunk: (tm, C) @ (C, th) -> f32 accumulate on the MXU, operands in
    # their native dtype (no upcast).
    h = jnp.dot(x_ref[...], wfc_ref[...], preferred_element_type=jnp.float32)
    h = h + bfc_ref[...].astype(jnp.float32)

    # GELU(approximate='tanh') in f32, simplified polynomial.
    c = 0.7978845608028654  # sqrt(2/pi)
    inner = c * h * (1.0 + 0.044715 * (h * h))
    g = h * (0.5 + 0.5 * jnp.tanh(inner))

    # partial c_proj: (tm, th) @ (th, C) -> f32 partial sum.
    partial = jnp.dot(g.astype(wproj_ref.dtype), wproj_ref[...],
                      preferred_element_type=jnp.float32)

    @pl.when(k == 0)
    def _():
        acc_ref[...] = partial          # first chunk: direct write (no zero pass)

    @pl.when(k > 0)
    def _():
        acc_ref[...] += partial

    @pl.when(k == pl.num_programs(1) - 1)
    def _():
        # dropout: inference mode -> identity
        o_ref[...] = (acc_ref[...]
                      + bproj_ref[...].astype(jnp.float32)).astype(o_ref.dtype)


# --------------------------------------------------------------------------- #
# Tiling helpers
# --------------------------------------------------------------------------- #
def _largest_divisor_tile(n, requested, align):
    """Largest t <= requested with n % t == 0 and t % align == 0, or n itself
    if n <= requested (full-dim blocks are always legal). None if no such t."""
    if n <= requested:
        return n
    t = (requested // align) * align
    while t >= align:
        if n % t == 0:
            return t
        t -= align
    return None


# --------------------------------------------------------------------------- #
# Wrapper
# --------------------------------------------------------------------------- #
def mlp_forward(x, wfc_t, b_fc, wproj_t, b_proj, *, tm=1024, th=1024):
    """Fused MLP forward.

    x:       (B, T, C)
    wfc_t:   (C, H)  c_fc weight, already in (in, out) layout (transpose hoisted)
    b_fc:    (H,)
    wproj_t: (H, C)  c_proj weight, already in (in, out) layout
    b_proj:  (C,)
    tm:      token tile (rows per MXU pass); picked from divisors of M.
    th:      hidden-dim reduction tile; picked from divisors of H (mult. of 128).
    """
    B, T, C = x.shape
    H = wfc_t.shape[1]
    M = B * T

    sub = 16 if x.dtype == jnp.bfloat16 else 8   # sublane packing granularity

    # ---- token tile: divisor of M -> no pad/slice copies on the common path.
    tm_sel = _largest_divisor_tile(M, tm, sub)
    m_total = M
    x2d = x.reshape(M, C)
    if tm_sel is None:
        # Fallback (ragged M not divisible by any aligned tile): pad once.
        tm_sel = max(sub, (min(tm, M) // sub) * sub)
        m_total = -(-M // tm_sel) * tm_sel
        x2d = jnp.pad(x2d, ((0, m_total - M), (0, 0)))

    # v7x: keep >= 2 i-steps so the "parallel" axis can shard across both TCs.
    if m_total // tm_sel == 1:
        half = tm_sel // 2
        if half >= sub and half % sub == 0 and m_total % half == 0:
            tm_sel = half

    # ---- hidden chunk: divisor of H, lane-aligned (multiple of 128) or full H.
    th_sel = _largest_divisor_tile(H, th, 128)
    if th_sel is None:
        th_sel = H

    bfc_2d = b_fc.reshape(1, H)
    bproj_2d = b_proj.reshape(1, C)

    grid = (m_total // tm_sel, H // th_sel)

    # ---- cost estimate: weights are re-streamed once per i-step.
    n_i = grid[0]
    itemsize = x.dtype.itemsize
    weight_bytes = (wfc_t.size * wfc_t.dtype.itemsize
                    + wproj_t.size * wproj_t.dtype.itemsize
                    + bfc_2d.size * bfc_2d.dtype.itemsize
                    + bproj_2d.size * bproj_2d.dtype.itemsize)
    bytes_accessed = (x2d.size * itemsize          # x read once
                      + m_total * C * itemsize     # y written once
                      + weight_bytes * n_i)        # weights re-streamed per i
    cost = pl.CostEstimate(
        flops=2 * m_total * C * H * 2,             # two matmuls
        transcendentals=m_total * H,               # tanh per hidden activation
        bytes_accessed=bytes_accessed)

    # ---- VMEM limit from the actual double-buffered working set (+ headroom).
    per_buf = (2 * tm_sel * C * itemsize           # x tile + out tile
               + 2 * C * th_sel * itemsize         # wfc chunk + wproj chunk
               + (th_sel + C) * itemsize)          # bias chunks
    working = 2 * per_buf + tm_sel * C * 4         # double-buffered + f32 acc
    vmem_limit = int(min(64 * 1024 * 1024,
                         max(32 * 1024 * 1024, working + 16 * 1024 * 1024)))

    out = pl.pallas_call(
        mlp_kernel,
        out_shape=jax.ShapeDtypeStruct((m_total, C), x.dtype),
        grid_spec=pltpu.PrefetchScalarGridSpec(
            num_scalar_prefetch=0,
            grid=grid,
            in_specs=[
                pl.BlockSpec((tm_sel, C), lambda i, k: (i, 0)),   # x tile (resident over k)
                pl.BlockSpec((C, th_sel), lambda i, k: (0, k)),   # W_fc^T chunk
                pl.BlockSpec((1, th_sel), lambda i, k: (0, k)),   # b_fc chunk
                pl.BlockSpec((th_sel, C), lambda i, k: (k, 0)),   # W_proj^T chunk
                pl.BlockSpec((1, C), lambda i, k: (0, 0)),        # b_proj (resident)
            ],
            out_specs=pl.BlockSpec((tm_sel, C), lambda i, k: (i, 0)),
            scratch_shapes=[pltpu.VMEM((tm_sel, C), jnp.float32)],
        ),
        compiler_params=pltpu.CompilerParams(
            dimension_semantics=("parallel", "arbitrary"),
            vmem_limit_bytes=vmem_limit,
        ),
        cost_estimate=cost,
    )(x2d, wfc_t, bfc_2d, wproj_t, bproj_2d)

    if m_total != M:
        out = out[:M]
    return out.reshape(B, T, C)


# --------------------------------------------------------------------------- #
# Pure-JAX reference (PyTorch (out,in)-layout weights, like nn.Linear)
# --------------------------------------------------------------------------- #
def reference_mlp(x, w_fc, b_fc, w_proj, b_proj):
    h = jnp.einsum("btc,hc->bth", x, w_fc) + b_fc
    c = 0.7978845608028654
    g = 0.5 * h * (1.0 + jnp.tanh(c * (h + 0.044715 * h ** 3)))
    y = jnp.einsum("bth,ch->btc", g, w_proj) + b_proj
    return y


if __name__ == "__main__":
    # Small but lane-dense config: n_embd=128 (C % 128 == 0), dropout=0.0.
    B, T, C = 2, 8, 128
    H = 4 * C

    key = jax.random.PRNGKey(0)
    kx, k1, k2, k3, k4 = jax.random.split(key, 5)

    x = jax.random.normal(kx, (B, T, C), dtype=jnp.float32)

    # nn.Linear-style init: U(-1/sqrt(fan_in), 1/sqrt(fan_in)), deterministic.
    bound_fc = 1.0 / (C ** 0.5)
    w_fc = jax.random.uniform(k1, (H, C), jnp.float32, -bound_fc, bound_fc)
    b_fc = jax.random.uniform(k2, (H,), jnp.float32, -bound_fc, bound_fc)
    bound_pr = 1.0 / (H ** 0.5)
    w_proj = jax.random.uniform(k3, (C, H), jnp.float32, -bound_pr, bound_pr)
    b_proj = jax.random.uniform(k4, (C,), jnp.float32, -bound_pr, bound_pr)

    # Transpose hoisted out of the forward path: store (in, out)-layout copies
    # once at parameter setup (a real model would keep them in this layout).
    wfc_t = jnp.transpose(w_fc)      # (C, H)
    wproj_t = jnp.transpose(w_proj)  # (H, C)

    # th=128 exercises the hidden-dim reduction axis (H/th = 4 k-steps);
    # tm is auto-picked from divisors of M (=16) and split for 2 TCs -> grid (2, 4).
    y = mlp_forward(x, wfc_t, b_fc, wproj_t, b_proj, th=128)
    jax.block_until_ready(y)

    y_ref = reference_mlp(x, w_fc, b_fc, w_proj, b_proj)
    assert y.shape == (B, T, C)
    # Tolerance covers MXU f32 matmul (bf16 multi-pass) default precision.
    assert jnp.allclose(y, y_ref, atol=2e-2, rtol=2e-2), "mismatch vs reference"

    print("KERNEL_OK")
</pallas_src>

<mosaic_0001>
module attributes {stable_mosaic.version = 11 : i64} {
  func.func @mlp_kernel(%arg0: i32, %arg1: i32, %arg2: memref<8x128xf32, #tpu.memory_space<vmem>>, %arg3: memref<128x128xf32, #tpu.memory_space<vmem>>, %arg4: memref<1x128xf32, #tpu.memory_space<vmem>>, %arg5: memref<128x128xf32, #tpu.memory_space<vmem>>, %arg6: memref<1x128xf32, #tpu.memory_space<vmem>>, %arg7: memref<8x128xf32, #tpu.memory_space<vmem>>, %arg8: memref<8x128xf32, #tpu.memory_space<vmem>>) attributes {dimension_semantics = [#tpu.dimension_semantics<parallel>, #tpu.dimension_semantics<arbitrary>], iteration_bounds = array<i64: 2, 4>, scalar_prefetch = 0 : i64, scratch_operands = 1 : i64, tpu.core_type = #tpu.core_type<tc>, window_params = [{transform_indices = @transform_0, window_bounds = array<i64: 8, 128>}, {transform_indices = @transform_1, window_bounds = array<i64: 128, 128>}, {transform_indices = @transform_2, window_bounds = array<i64: 1, 128>}, {transform_indices = @transform_3, window_bounds = array<i64: 128, 128>}, {pipeline_mode = #tpu.pipeline_mode<synchronous>, transform_indices = @transform_4, window_bounds = array<i64: 1, 128>}, {transform_indices = @transform_5, window_bounds = array<i64: 8, 128>}]} {
    %c0 = arith.constant 0 : index
    %c0_0 = arith.constant 0 : index
    %0 = vector.load %arg2[%c0, %c0_0] : memref<8x128xf32, #tpu.memory_space<vmem>>, vector<8x128xf32>
    %c0_1 = arith.constant 0 : index
    %c0_2 = arith.constant 0 : index
    %1 = vector.load %arg3[%c0_1, %c0_2] : memref<128x128xf32, #tpu.memory_space<vmem>>, vector<128x128xf32>
    %cst = arith.constant dense<0.000000e+00> : vector<8x128xf32>
    %2 = tpu.matmul %0, %1, %cst {dimension_numbers = #tpu.dot_dimension_numbers<[1], [0], [0], [1], [0, 0, 1, 1], [], []>} : vector<8x128xf32>, vector<128x128xf32>, vector<8x128xf32> -> vector<8x128xf32>
    %c0_3 = arith.constant 0 : index
    %c0_4 = arith.constant 0 : index
    %3 = vector.load %arg4[%c0_3, %c0_4] : memref<1x128xf32, #tpu.memory_space<vmem>>, vector<1x128xf32>
    %4 = vector.broadcast %3 : vector<1x128xf32> to vector<8x128xf32>
    %5 = arith.addf %2, %4 : vector<8x128xf32>
    %cst_5 = arith.constant 0.797884583 : f32
    %6 = vector.broadcast %cst_5 : f32 to vector<8x128xf32>
    %7 = arith.mulf %6, %5 : vector<8x128xf32>
    %8 = arith.mulf %5, %5 : vector<8x128xf32>
    %cst_6 = arith.constant 4.471500e-02 : f32
    %9 = vector.broadcast %cst_6 : f32 to vector<8x128xf32>
    %10 = arith.mulf %9, %8 : vector<8x128xf32>
    %cst_7 = arith.constant 1.000000e+00 : f32
    %11 = vector.broadcast %cst_7 : f32 to vector<8x128xf32>
    %12 = arith.addf %11, %10 : vector<8x128xf32>
    %13 = arith.mulf %7, %12 : vector<8x128xf32>
    %14 = math.tanh %13 : vector<8x128xf32>
    %cst_8 = arith.constant 5.000000e-01 : f32
    %15 = vector.broadcast %cst_8 : f32 to vector<8x128xf32>
    %16 = arith.mulf %15, %14 : vector<8x128xf32>
    %cst_9 = arith.constant 5.000000e-01 : f32
    %17 = vector.broadcast %cst_9 : f32 to vector<8x128xf32>
    %18 = arith.addf %17, %16 : vector<8x128xf32>
    %19 = arith.mulf %5, %18 : vector<8x128xf32>
    %c0_10 = arith.constant 0 : index
    %c0_11 = arith.constant 0 : index
    %20 = vector.load %arg5[%c0_10, %c0_11] : memref<128x128xf32, #tpu.memory_space<vmem>>, vector<128x128xf32>
    %cst_12 = arith.constant dense<0.000000e+00> : vector<8x128xf32>
    %21 = tpu.matmul %19, %20, %cst_12 {dimension_numbers = #tpu.dot_dimension_numbers<[1], [0], [0], [1], [0, 0, 1, 1], [], []>} : vector<8x128xf32>, vector<128x128xf32>, vector<8x128xf32> -> vector<8x128xf32>
    %c0_i32 = arith.constant 0 : i32
    %22 = arith.cmpi eq, %arg1, %c0_i32 : i32
    %23 = arith.extui %22 : i1 to i32
    %c0_i32_13 = arith.constant 0 : i32
    %24 = arith.cmpi ne, %23, %c0_i32_13 : i32
    scf.if %24 {
      %c0_17 = arith.constant 0 : index
      %c0_18 = arith.constant 0 : index
      %31 = vector.load %arg8[%c0_17, %c0_18] : memref<8x128xf32, #tpu.memory_space<vmem>>, vector<8x128xf32>
      tpu.vector_store %arg8[%c0_17, %c0_18], %21 {strides = array<i32>} : memref<8x128xf32, #tpu.memory_space<vmem>>, vector<8x128xf32>,
    } else {
    }
    %c0_i32_14 = arith.constant 0 : i32
    %25 = arith.cmpi sgt, %arg1, %c0_i32_14 : i32
    %26 = arith.extui %25 : i1 to i32
    %c0_i32_15 = arith.constant 0 : i32
    %27 = arith.cmpi ne, %26, %c0_i32_15 : i32
    scf.if %27 {
      %c0_17 = arith.constant 0 : index
      %c0_18 = arith.constant 0 : index
      %31 = vector.load %arg8[%c0_17, %c0_18] : memref<8x128xf32, #tpu.memory_space<vmem>>, vector<8x128xf32>
      %32 = arith.addf %31, %21 : vector<8x128xf32>
      %c0_19 = arith.constant 0 : index
      %c0_20 = arith.constant 0 : index
      %33 = vector.load %arg8[%c0_19, %c0_20] : memref<8x128xf32, #tpu.memory_space<vmem>>, vector<8x128xf32>
      tpu.vector_store %arg8[%c0_19, %c0_20], %32 {strides = array<i32>} : memref<8x128xf32, #tpu.memory_space<vmem>>, vector<8x128xf32>,
    } else {
    }
    %c3_i32 = arith.constant 3 : i32
    %28 = arith.cmpi eq, %arg1, %c3_i32 : i32
    %29 = arith.extui %28 : i1 to i32
    %c0_i32_16 = arith.constant 0 : i32
    %30 = arith.cmpi ne, %29, %c0_i32_16 : i32
    scf.if %30 {
      %c0_17 = arith.constant 0 : index
      %c0_18 = arith.constant 0 : index
      %31 = vector.load %arg8[%c0_17, %c0_18] : memref<8x128xf32, #tpu.memory_space<vmem>>, vector<8x128xf32>
      %c0_19 = arith.constant 0 : index
      %c0_20 = arith.constant 0 : index
      %32 = vector.load %arg6[%c0_19, %c0_20] : memref<1x128xf32, #tpu.memory_space<vmem>>, vector<1x128xf32>
      %33 = vector.broadcast %32 : vector<1x128xf32> to vector<8x128xf32>
      %34 = arith.addf %31, %33 : vector<8x128xf32>
      %c0_21 = arith.constant 0 : index
      %c0_22 = arith.constant 0 : index
      %35 = vector.load %arg7[%c0_21, %c0_22] : memref<8x128xf32, #tpu.memory_space<vmem>>, vector<8x128xf32>
      tpu.vector_store %arg7[%c0_21, %c0_22], %34 {strides = array<i32>} : memref<8x128xf32, #tpu.memory_space<vmem>>, vector<8x128xf32>,
    } else {
    }
    return
  }
  func.func @transform_0(%arg0: i32, %arg1: i32) -> (i32, i32) {
    %c0_i32 = arith.constant 0 : i32
    %c0_i32_0 = arith.constant 0 : i32
    return %arg0, %c0_i32 : i32, i32
  }
  func.func @transform_1(%arg0: i32, %arg1: i32) -> (i32, i32) {
    %c0_i32 = arith.constant 0 : i32
    %c0_i32_0 = arith.constant 0 : i32
    return %c0_i32, %arg1 : i32, i32
  }
  func.func @transform_2(%arg0: i32, %arg1: i32) -> (i32, i32) {
    %c0_i32 = arith.constant 0 : i32
    %c0_i32_0 = arith.constant 0 : i32
    return %c0_i32, %arg1 : i32, i32
  }
  func.func @transform_3(%arg0: i32, %arg1: i32) -> (i32, i32) {
    %c0_i32 = arith.constant 0 : i32
    %c0_i32_0 = arith.constant 0 : i32
    return %arg1, %c0_i32 : i32, i32
  }
  func.func @transform_4(%arg0: i32, %arg1: i32) -> (i32, i32) {
    %c0_i32 = arith.constant 0 : i32
    %c0_i32_0 = arith.constant 0 : i32
    %c0_i32_1 = arith.constant 0 : i32
    return %c0_i32, %c0_i32_0 : i32, i32
  }
  func.func @transform_5(%arg0: i32, %arg1: i32) -> (i32, i32) {
    %c0_i32 = arith.constant 0 : i32
    %c0_i32_0 = arith.constant 0 : i32
    return %arg0, %c0_i32 : i32, i32
  }
}

</mosaic_0001>

<bundles_post_ra>
// kernel: tpu_custom_call.1
= control target key start
LH: loop header
LB: loop body
LE: loop exit
PB: predicated region body
PF: predicated region fallthrough
CT: control target
= control target key end

     0   :  { %s1387_s0 = inlined_call_operand.hbm [shape: f32[16,128], index: 0, kind: input, shape index: {}]   ;;  %s1388_s1 = inlined_call_operand.hbm [shape: f32[128,512], index: 1, kind: input, shape index: {}]   ;;  %s1389_s2 = inlined_call_operand.hbm [shape: f32[1,512], index: 2, kind: input, shape index: {}]   ;;  %s1390_s3 = inlined_call_operand.hbm [shape: f32[512,128], index: 3, kind: input, shape index: {}]   ;;  %s1391_s4 = inlined_call_operand.vmem [shape: f32[1,128], index: 4, kind: input, shape index: {}]   ;;  %s1392_s5 = inlined_call_operand.hbm [shape: f32[16,128], index: 5, kind: output, shape index: {}]  }
   0x1   :  { %1405 = sst [smem:[#allocation26_spill]] %s1387_s0 }
   0x2   :  { %1406 = sst [smem:[#allocation27_spill]] %s1388_s1 }
   0x3   :  { %1407 = sst [smem:[#allocation28_spill]] %s1391_s4 }
   0x4   :  { %1408 = sst [smem:[#allocation29_spill]] %s1392_s5 }
   0x5   :  { %10 = vsyncpa [#allocation4], 0 }
   0x6   :  { %12 = vsyncpa [#allocation4 + $0x1], 0 }
   0x7   :  { %13 = vsyncpa [#allocation7], 0 }
   0x8   :  { %15 = vsyncpa [#allocation7 + $0x1], 0 }
   0x9   :  { %16 = vsyncpa [#allocation10], 0 }
   0xa   :  { %18 = vsyncpa [#allocation10 + $0x1], 0 }
   0xb   :  { %19 = vsyncpa [#allocation5], 0 }
   0xc   :  { %21 = vsyncpa [#allocation5 + $0x1], 0  ;;  %s1071_s18 = smov 0   ;;  %s1073_s19 = smov 0  }
   0xd   :  { %s1075_s20 = smov 0   ;;  %s1077_s21 = smov 0  }
   0xe   :  { %s1079_s22 = smov 0   ;;  %s1081_s23 = smov 0  }
   0xf   :  { %s1083_s24 = smov 0   ;;  %s1085_s25 = smov 0  }
  0x10   :  { %s1087_s26 = smov 0   ;;  %s1089_s27 = smov 0  }
  0x11   :  { %s1091_s28 = smov 0  }
  0x12 LB: > { %1409 = sst [smem:[#allocation16_spill]] %s1004_s20  ;;  %p54_p0 = scmp.eq.s32.totalorder %s1036_s28, 0  ;;  %s1036_s28 = sphi %s1091_s28, %s27_s28   ;;  %s1032_s27 = sphi %s1089_s27, %s1445_s27   ;;  %s1028_s26 = sphi %s1087_s26, %s1451_s26   ;;  %s1024_s25 = sphi %s1085_s25, %s1443_s25   ;;  %s1020_s24 = sphi %s1083_s24, %s1450_s24   ;;  %s1016_s23 = sphi %s1081_s23, %s1442_s23   ;;  %s1012_s22 = sphi %s1079_s22, %s1449_s22   ;;  %s1008_s21 = sphi %s1077_s21, %s1448_s21   ;;  %s1004_s20 = sphi %s1075_s20, %s1440_s20   ;;  %s1000_s19 = sphi %s1073_s19, %s1447_s19   ;;  %s996_s18 = sphi %s1071_s18, %s1446_s18  }
  0x13   : > { %1410 = sst [smem:[#allocation17_spill]] %s1008_s21  ;;  %p79_p1 = scmp.ne.s32.totalorder %s1004_s20, %s1000_s19 }
  0x14   : > { %1411 = sst [smem:[#allocation18_spill]] %s1016_s23  ;;  %p1398_p2 = scmp.lt.s32.totalorder %s1036_s28, 8 }
  0x15   : > { %1412 = sst [smem:[#allocation19_spill]] %s1024_s25  ;;  %s230_s30 = sand.u32 1, %s1036_s28  }
  0x16   : > { %1413 = sst [smem:[#allocation20_spill]] %s1032_s27  ;;  %p81_p3 = por %p79_p1, %p54_p0 }
  0x17   : > { %s1135_s6 = sand.u32 1, %s1004_s20   ;;  %s645_s7 = sshll.u32 %s1028_s26, 3 }
  0x18   : > { %s1393_s8 = sshll.u32 %s1135_s6, 7  ;;  %s1414_s1 = sld [smem:[#allocation27_spill]] }
  0x19   : > { %s234_s13 = scalar_lea.vmem [#allocation6], %s1393_s8  ;;  %p1146_p4 = pnand %p1398_p2, %p81_p3 }
  0x1a   : > { %s241_s14 = sshll.u32 %s234_s13, 4  ;;  %s1150_s16 = scalar_lea.sflag [#allocation7], %s230_s30  ;;  %s242_s14 = int_to_ptr.vmem [resolvable:$true] %s241_s14 }
  0x1b   : > { %s1038_s17 = smov 512   ;;  %s1395_s9 = smov 8  }
  0x1c   : > { %p649_p5 = scmp.ge.s32.totalorder %s1036_s28, 1  ;;  %p288_p6 = scmp.lt.s32.totalorder %s1036_s28, 9 }
  0x1d   : > { %s1164_s10 = sadd.s32 4294967295, %s1036_s28   ;;  %s36_s13 = sadd.s32 1, %s1028_s26 }
  0x1e   : > { %s238_s11 = scalar_lea.hbm %s1414_s1, %s645_s7  ;;  %s1394_s7 = smov 128  }
  0x1f   : > { %s239_s12 = sshll.u32 %s238_s11, 4  ;;  %p1159_p7 = pnand %p649_p5, %p288_p6  ;;  %s240_s12 = int_to_ptr.hbm [resolvable:$true] %s239_s12 }
  0x20   : > { %678 = dma.hbm_to_vmem [thread:$0]  (!%p1146_p4), %s240_s12, 2048, %s242_s14, %s1150_s16, %s1038_s17, %s1394_s7, %s1395_s9  }
  0x21   : > { %s639_s11 = sadd.s32 4294967294, %s1036_s28   ;;  %p37_p8 = scmp.ge.s32.totalorder %s36_s13, 4 }
  0x22   : > { %s39_s8 = sadd.s32 1, %s1032_s27  ;;  %s46_s12 = sadd.s32 1, %s1016_s23 }
  0x23   : > { %p53_p9 = scmp.ne.s32.totalorder %s1016_s23, %s1012_s22  ;;  %s1453_s13 = smov (%p37_p8, %s36_s13), 0 }
  0x24   : > { %1417 = sst [smem:[#allocation21_spill]] %s1453_s13  ;;  %s1455_s8 = smov (!%p37_p8, %s39_s8), %s1032_s27 }
  0x25   : > { %p1180_p10 = por %p54_p0, %p53_p9  ;;  %p59_p11 = scmp.ne.s32.totalorder %s1012_s22, %s1008_s21 }
  0x26   : > { %p41_p12 = scmp.ge.s32.totalorder %s1455_s8, 2  ;;  %p60_p13 = scmp.eq.s32.totalorder %s1164_s10, 0 }
  0x27   : > { %s69_s17 = ssub.s32 %s1028_s26, %s1453_s13  ;;  %p85_p1 = scmp.ne.s32.totalorder %s1000_s19, %s996_s18 }
  0x28   : > { %s1457_s8 = smov (%p41_p12, %s1455_s8), 0  ;;  %p1196_p3 = por %p60_p13, %p59_p11 }
  0x29   : > { %1419 = sst [smem:[#allocation22_spill]] %s1457_s8  ;;  %p70_p0 = scmp.eq.s32.totalorder %s69_s17, 0 }
  0x2a   : > { %s43_s9 = ssub.s32 %s1032_s27, %s1457_s8  ;;  %p1202_p5 = por %p85_p1, %p60_p13 }
  0x2b   : > { %p44_p6 = scmp.eq.s32.totalorder %s43_s9, 0  ;;  %p182_p8 = scmp.eq.s32.totalorder %s1164_s10, 7 }
  0x2c   : > { %s1422_s1 = sadd.s32 1, %s1004_s20  ;;  %p188_p2 = scmp.eq.s32.totalorder %s639_s11, 7 }
  0x2d   : > { %s1210_s18 = scalar_select %p70_p0, %s1004_s20, %s1422_s1  }
  0x2e   : > { %s1213_s13 = scalar_select %p44_p6, %s1016_s23, %s46_s12  }
  0x2f   : > { %1423 = sst [smem:[#allocation23_spill]] %s1210_s18  ;;  %p1218_p12 = por %p182_p8, %p53_p9 }
  0x30   : > { %1424 = sst [smem:[#allocation24_spill]] %s1213_s13  ;;  %s211_s17 = sand.u32 1, %s1016_s23  }
  0x31   : > { %s643_s8 = sshll.u32 %s1032_s27, 3  ;;  %p1227_p13 = por %p188_p2, %p59_p11 }
  0x32   : > { %s642_s25 = sshll.u32 %s211_s17, 3  ;;  %s1428_s0 = sld [smem:[#allocation26_spill]] }
  0x33   : > { %s1426_s9 = scalar_select %p1227_p13, 1, 0 }
  0x34   : > { %s215_s11 = scalar_lea.vmem [#allocation3], %s642_s25  ;;  %p1429_p9 = scmp.lt.s32.totalorder %s1036_s28, 8 }
  0x35   : > { %1427 = sst [smem:[#allocation25_spill]] %s1426_s9  ;;  %s223_s23 = sshll.u32 %s215_s11, 4  ;;  %s224_s23 = int_to_ptr.vmem [resolvable:$true] %s223_s23 }
  0x36   : > { %p673_p2 = pnand %p1429_p9, %p1180_p10  ;;  %s257_s20 = scalar_lea.hbm %s1389_s2, %s1028_s26 }
  0x37   : > { %s259_s9 = sshll.u32 %s257_s20, 4  ;;  %s212_s4 = scalar_lea.sflag [#allocation4], %s211_s17  ;;  %s260_s9 = int_to_ptr.hbm [resolvable:$true] %s259_s9 }
  0x38   : > { %s219_s12 = scalar_lea.hbm %s1428_s0, %s643_s8  ;;  %s254_s8 = scalar_lea.vmem [#allocation8], %s1135_s6 }
  0x39   : > { %s221_s13 = sshll.u32 %s219_s12, 4  ;;  %s261_s1 = sshll.u32 %s254_s8, 4  ;;  %s222_s13 = int_to_ptr.hbm [resolvable:$true] %s221_s13  ;;  %s262_s1 = int_to_ptr.vmem [resolvable:$true] %s261_s1 }
  0x3a   : > { %675 = dma.hbm_to_vmem [thread:$0]  (!%p673_p2), %s222_s13, 128, %s224_s23, %s212_s4  }
  0x3b   : > { %681 = dma.hbm_to_vmem [thread:$0]  (!%p1146_p4), %s260_s9, 16, %s262_s1, %s1150_s16  }
  0x3c   : > { %s661_s25 = sshll.u32 %s1028_s26, 7  ;;  %s1430_s0 = sshll.u32 %s1135_s6, 7 }
  0x3d   : > { %s277_s11 = scalar_lea.hbm %s1390_s3, %s661_s25  ;;  %s272_s21 = scalar_lea.vmem [#allocation9], %s1430_s0 }
  0x3e   : > { %s280_s27 = sshll.u32 %s272_s21, 4  ;;  %s278_s18 = sshll.u32 %s277_s11, 4  ;;  %s281_s27 = int_to_ptr.vmem [resolvable:$true] %s280_s27  ;;  %s279_s18 = int_to_ptr.hbm [resolvable:$true] %s278_s18 }
  0x3f   : > { %s269_s20 = scalar_lea.sflag [#allocation10], %s1135_s6  ;;  %s1431_s23 = smov 8  }
  0x40   : > { %s1432_s13 = smov 128   ;;  %292 = sbr.rel (%p1159_p7) target bundleno = 429 (0x1ad), region = 40 }
  0x41   : > { %684 = dma.hbm_to_vmem [thread:$0]  (!%p1146_p4), %s279_s18, 2048, %s281_s27, %s269_s20, %s1432_s13, %s1432_s13, %s1431_s23  }
  0x42   : > { %s1261_s16 = sand.u32 (!%p1159_p7), 1, %s1012_s22  }
  0x43   : > { %s650_s0 = sshll.u32 (!%p1159_p7), %s1261_s16, 3  ;;  %s295_s21 = scalar_lea.sflag (!%p1159_p7), [#allocation4], %s1261_s16 }
  0x44   : > { %s1267_s17 = scalar_lea.vmem (!%p1159_p7), [#allocation3], %s650_s0 }
  0x45   : > { %979 = dma.done.wait (%p1196_p3), %s295_s21, 128  }
  0x46   : > { %981 = vsyncadd (%p1196_p3), %s295_s21, 4294967168  ;;  %s304_s6 = sand.u32 1, %s1164_s10   ;;  %s1275_s15 = sand.u32 1, %s1000_s19  }
  0x47   : > { %s651_s30 = sshll.u32 %s1275_s15, 7  ;;  %s305_s9 = scalar_lea.sflag [#allocation7], %s304_s6 }
  0x48   : > { %s1278_s4 = scalar_lea.vmem [#allocation6], %s651_s30 }
  0x49   : > { %983 = dma.done.wait (%p1202_p5), %s305_s9, 2064  }
  0x4a   : > { %985 = vsyncadd (%p1202_p5), %s305_s9, 4294965232  ;;  %s317_s7 = scalar_lea.vmem [#allocation8], %s1275_s15  ;;  %s324_s8 = scalar_lea.sflag [#allocation10], %s1275_s15 }
  0x4b   : > { %s1286_s1 = scalar_lea.vmem [#allocation9], %s651_s30 }
  0x4c   : > { %987 = dma.done.wait (%p1202_p5), %s324_s8, 2048  }
  0x4d   : > { %989 = vsyncadd (%p1202_p5), %s324_s8, 4294965248  ;;  %v386_v0 = vld [vmem:[%s1278_s4 + $0x78] sm:$0xff]  ;;  %v385_v1 = vld [vmem:[%s1278_s4 + $0x70] sm:$0xff]  ;;  %s368_s29 = scalar_lea.vmem [#allocation11], %s650_s0  ;;  %p654_p4 = scmp.ne.s32.totalorder %s1020_s24, 0 }
  0x4e   : > { %391 = vmatpush.msra.mxu0 %v386_v0  ;;  %v384_v2 = vld [vmem:[%s1278_s4 + $0x68] sm:$0xff]  ;;  %v383_v3 = vld [vmem:[%s1278_s4 + $0x60] sm:$0xff]  ;;  %v382_v5 = vld [vmem:[%s1278_s4 + $0x58] sm:$0xff] }
  0x4f   : > { %v435_v4 = vld [vmem:[%s1286_s1 + $0x78] sm:$0xff]  ;;  %v434_v6 = vld [vmem:[%s1286_s1 + $0x70] sm:$0xff]  ;;  %v433_v7 = vld [vmem:[%s1286_s1 + $0x68] sm:$0xff] }
  0x50   : > { %392 = vmatpush.msra.mxu0 %v385_v1  ;;  %436 = vmatpush.msra.mxu1 %v435_v4  ;;  %v381_v8 = vld [vmem:[%s1278_s4 + $0x50] sm:$0xff]  ;;  %v432_v9 = vld [vmem:[%s1286_s1 + $0x60] sm:$0xff]  ;;  %v378_v12 = vld [vmem:[%s1278_s4 + $0x38] sm:$0xff] }
  0x51   : > { %v380_v10 = vld [vmem:[%s1278_s4 + $0x48] sm:$0xff]  ;;  %v379_v11 = vld [vmem:[%s1278_s4 + $0x40] sm:$0xff]  ;;  %v377_v13 = vld [vmem:[%s1278_s4 + $0x30] sm:$0xff] }
  0x52   : > { %393 = vmatpush.msra.mxu0 %v384_v2  ;;  %437 = vmatpush.msra.mxu1 %v434_v6  ;;  %v376_v14 = vld [vmem:[%s1278_s4 + $0x28] sm:$0xff]  ;;  %v375_v15 = vld [vmem:[%s1278_s4 + $0x20] sm:$0xff]  ;;  %v374_v16 = vld [vmem:[%s1278_s4 + $0x18] sm:$0xff] }
  0x53   : > { %v373_v17 = vld [vmem:[%s1278_s4 + $0x10] sm:$0xff]  ;;  %v372_v18 = vld [vmem:[%s1278_s4 + $0x8] sm:$0xff]  ;;  %v371_v19 = vld [vmem:[%s1278_s4] sm:$0xff] }
  0x54   : > { %394 = vmatpush.msra.mxu0 %v383_v3  ;;  %438 = vmatpush.msra.mxu1 %v433_v7  ;;  %v370_v20 = vld [vmem:[%s1267_s17] sm:$0xff]  ;;  %v428_v24 = vld [vmem:[%s1286_s1 + $0x40] sm:$0xff] }
  0x55   : > { %v431_v21 = vld [vmem:[%s1286_s1 + $0x58] sm:$0xff]  ;;  %v430_v22 = vld [vmem:[%s1286_s1 + $0x50] sm:$0xff]  ;;  %v429_v23 = vld [vmem:[%s1286_s1 + $0x48] sm:$0xff] }
  0x56   : > { %395 = vmatpush.msra.mxu0 %v382_v5  ;;  %439 = vmatpush.msra.mxu1 %v432_v9  ;;  %v427_v25 = vld [vmem:[%s1286_s1 + $0x38] sm:$0xff]  ;;  %v426_v26 = vld [vmem:[%s1286_s1 + $0x30] sm:$0xff]  ;;  %v425_v27 = vld [vmem:[%s1286_s1 + $0x28] sm:$0xff] }
  0x57   : > { %v424_v28 = vld [vmem:[%s1286_s1 + $0x20] sm:$0xff]  ;;  %v423_v29 = vld [vmem:[%s1286_s1 + $0x18] sm:$0xff]  ;;  %v422_v30 = vld [vmem:[%s1286_s1 + $0x10] sm:$0xff] }
  0x58   : > { %396 = vmatpush.msra.mxu0 %v381_v8  ;;  %440 = vmatpush.msra.mxu1 %v431_v21  ;;  %v421_v31 = vld [vmem:[%s1286_s1 + $0x8] sm:$0xff]  ;;  %v420_v32 = vld [vmem:[%s1286_s1] sm:$0xff] }
  0x59   : > { %v782_v33 = vld [vmem:[%s317_s7] ss:$0 sm:$0xff] }
  0x5a   : > { %397 = vmatpush.msra.mxu0 %v380_v10  ;;  %441 = vmatpush.msra.mxu1 %v430_v22 }
  0x5c   : > { %398 = vmatpush.msra.mxu0 %v379_v11  ;;  %442 = vmatpush.msra.mxu1 %v429_v23 }
  0x5e   : > { %399 = vmatpush.msra.mxu0 %v378_v12  ;;  %443 = vmatpush.msra.mxu1 %v428_v24 }
  0x60   : > { %400 = vmatpush.msra.mxu0 %v377_v13  ;;  %444 = vmatpush.msra.mxu1 %v427_v25 }
  0x62   : > { %401 = vmatpush.msra.mxu0 %v376_v14  ;;  %445 = vmatpush.msra.mxu1 %v426_v26 }
  0x64   : > { %402 = vmatpush.msra.mxu0 %v375_v15  ;;  %446 = vmatpush.msra.mxu1 %v425_v27 }
  0x66   : > { %403 = vmatpush.msra.mxu0 %v374_v16  ;;  %447 = vmatpush.msra.mxu1 %v424_v28 }
  0x68   : > { %404 = vmatpush.msra.mxu0 %v373_v17  ;;  %448 = vmatpush.msra.mxu1 %v423_v29 }
  0x6a   : > { %405 = vmatpush.msra.mxu0 %v372_v18  ;;  %449 = vmatpush.msra.mxu1 %v422_v30 }
  0x6c   : > { %406 = vmatpush.msra.mxu0 %v371_v19  ;;  %450 = vmatpush.msra.mxu1 %v421_v31 }
  0x6d   : > { %407 = vmatmul.f32.vlgmr.msra.gmra.mxu0 %v370_v20 }
  0x6e   : > { %451 = vmatpush.msra.mxu1 %v420_v32 }
  0xea   : > { %v408_v34 = vpop.f32.mrf.mxu0 }
  0xeb   : > { %v409_v35 = vadd.f32 %v782_v33, %v408_v34 }
  0xed   : > { %v412_v36 = vmul.f32 %v409_v35, %v409_v35  ;;  %v411_v38 = vmul.f32 0.7978846, %v409_v35 }
  0xef   : > { %v413_v37 = vmul.f32 0.044715, %v412_v36 }
  0xf1   : > { %v414_v39 = vadd.f32 1.0, %v413_v37 }
  0xf3   : > { %v415_v40 = vmul.f32 %v414_v39, %v411_v38 }
  0xf5   : > { %783 = vtanh.f32 %v415_v40 }
  0xfb   : > { %v784_v41 = vpop.eup %783 }
  0xfc   : > { %v417_v42 = vmul.f32 0.5, %v784_v41 }
  0xfe   : > { %v418_v43 = vadd.f32 0.5, %v417_v42 }
 0x100   : > { %v419_v44 = vmul.f32 %v418_v43, %v409_v35 }
 0x102   : > { %452 = vmatmul.f32.vlgmr.msra.gmra.mxu1 %v419_v44 }
 0x17b   : > { %459 = sbr.rel (%p654_p4) target bundleno = 385 (0x181), region = 60 }
 0x17f   : > { %v453_v45 = vpop.f32.mrf.mxu1 }
 0x180   : > { %460 = vst [vmem:[#allocation2] sm:$0xff] %v453_v45 }
 0x181 PF: > { %p655_p7 = scmp.le.s32.totalorder %s1020_s24, 0 }
 0x183   : > { %464 = sbr.rel (%p655_p7) target bundleno = 396 (0x18c), region = 64 }
 0x188   : > { %v465_v46 = vld [vmem:[#allocation2] sm:$0xff] }
 0x189   : > { %v466_v47 = vadd.f32 %v465_v46, %v453_v45 }
 0x18b   : > { %467 = vst [vmem:[#allocation2] sm:$0xff] %v466_v47 }
 0x18c PF: > { %p656_p10 = scmp.ne.s32.totalorder %s1020_s24, 3 }
 0x18d   : > { %s1433_s12 = sld [smem:[#allocation28_spill]] (!%p656_p10) }
 0x18e   : > { %471 = sbr.rel (%p656_p10) target bundleno = 408 (0x198), region = 68 }
 0x193   : > { %v472_v48 = vld [vmem:[#allocation2] sm:$0xff] }
 0x194   : > { %v785_v49 = vld [vmem:[%s1433_s12] ss:$0 sm:$0xff] }
 0x195   : > { %v477_v50 = vadd.f32 %v785_v49, %v472_v48 }
 0x197   : > { %478 = vst [vmem:[%s368_s29] sm:$0xff] %v477_v50 }
 0x198 PF: > { %s1434_s14 = sld [smem:[#allocation19_spill]]  ;;  %s492_s0 = sshll.u32 %s368_s29, 4  ;;  %s493_s0 = int_to_ptr.vmem [resolvable:$true] %s492_s0 }
 0x199   : > { %s1435_s20 = sld [smem:[#allocation29_spill]]  ;;  %s480_s21 = scalar_lea.sflag [#allocation5], %s1261_s16 }
 0x19e   : > { %s658_s11 = sshll.u32 %s1434_s14, 3 }
 0x19f   : > { %s1436_s13 = smov %s1435_s20  ;;  %s490_s23 = scalar_lea.hbm %s1435_s20, %s658_s11 }
 0x1a0   : > { %s494_s24 = sshll.u32 %s490_s23, 4  ;;  %s926_s9 = scalar_lea.hbm %s1436_s13, 16  ;;  %s495_s24 = int_to_ptr.hbm [resolvable:$true] %s494_s24 }
 0x1a1   : > { %s920_s17 = sshra.s32 %s495_s24, 4  ;;  %s921_s17 = int_to_ptr.hbm [resolvable:$true] %s920_s17 }
 0x1a2   : > { %s922_s6 = scalar_lea.hbm %s921_s17, 8  ;;  %p927_p0 = scmp.lt.s32.totalorder %s921_s17, %s1436_s13 }
 0x1a3   : > { %p923_p11 = scmp.ne.s32.totalorder %s921_s17, %s922_s6  ;;  %p928_p5 = scmp.lt.s32.totalorder %s926_s9, %s922_s6 }
 0x1a5   : > { %p924_p1 = pnand %p923_p11, %p1218_p12  ;;  %p929_p6 = por %p928_p5, %p927_p0 }
 0x1a7   : > { %p925_p3 = pneg %p924_p1 }
 0x1a9   : > { %p930_p8 = pnand %p929_p6, %p925_p3 }
 0x1ab   : > { %933 = shalt.err (!%p930_p8)
}
 0x1ac   : > { %670 = dma.vmem_to_hbm [thread:$0]  (%p1218_p12), %s493_s0, 128, %s495_s24, %s480_s21  }
 0x1ad PF: > { %s1437_s16 = sld [smem:[#allocation17_spill]]  ;;  %p690_p9 = scmp.ge.s32.totalorder %s1036_s28, 2 }
 0x1af   : > { %p686_p2 = pnand %p690_p9, %p1227_p13 }
 0x1b1   : > { %p687_p4 = pneg %p686_p2 }
 0x1b3   : > { %s506_s1 = sand.u32 1, %s1437_s16  }
 0x1b4   : > { %s507_s29 = scalar_lea.sflag [#allocation5], %s506_s1 }
 0x1b5   : > { %991 = dma.done.wait (%p687_p4), %s507_s29, 128  }
 0x1b6   : > { %993 = vsyncadd (%p687_p4), %s507_s29, 4294967168  ;;  %s27_s28 = sadd.s32 1, %s1036_s28   ;;  %s1439_s10 = sld [smem:[#allocation16_spill]] }
 0x1b7   : > { %p24_p7 = scmp.ge.s32.totalorder %s27_s28, 10   ;;  %s1440_s20 = sld [smem:[#allocation23_spill]] }
 0x1b8   : > { %s1441_s5 = sld [smem:[#allocation18_spill]]  ;;  %s1446_s18 = smov %s1000_s19 }
 0x1b9   : > { %s1442_s23 = sld [smem:[#allocation24_spill]]  ;;  %s1448_s21 = smov %s1012_s22 }
 0x1ba   : > { %s1443_s25 = sld [smem:[#allocation20_spill]]  ;;  %s1450_s24 = smov %s1028_s26 }
 0x1bb   : > { %s1444_s12 = sld [smem:[#allocation21_spill]] }
 0x1bc   : > { %s1445_s27 = sld [smem:[#allocation22_spill]]  ;;  %s1447_s19 = smov %s1439_s10 }
 0x1bd   :  { %26 = sbr.rel (!%p24_p7) target bundleno = 18 (0x12), region = 134 }
 0x1be   : > { %s1449_s22 = smov %s1441_s5 }
 0x1c1   : > { %s1451_s26 = smov %s1444_s12 }
 0x1c2   :  { %513 = vsyncpa [#allocation4], 1 }
 0x1c3   :  { %515 = vsyncpa [#allocation4 + $0x1], 1 }
 0x1c4   :  { %516 = vsyncpa [#allocation7], 1 }
 0x1c5   :  { %518 = vsyncpa [#allocation7 + $0x1], 1 }
 0x1c6   :  { %519 = vsyncpa [#allocation10], 1 }
 0x1c7   :  { %521 = vsyncpa [#allocation10 + $0x1], 1 }
 0x1c8   :  { %522 = vsyncpa [#allocation5], 1 }
 0x1c9   :  { %524 = vsyncpa [#allocation5 + $0x1], 1 }

</bundles_post_ra>
